<compile_context>
chip_gen: v5e
topology: v5e:2x2
jax: 0.10.0
libtpu: 0.0.40
codegen_flags: <defaults>
</compile_context>

<pallas_src>
import functools

import jax
import jax.numpy as jnp
from jax.experimental import pallas as pl
from jax.experimental.pallas import tpu as pltpu


_LANES = 128
_MAX_INKERNEL_PARTIAL_BLOCKS = 64   # above this, pre-reduce partials once


# --------------------------------------------------------------------------
# Kernels
# --------------------------------------------------------------------------
def _fused_quant_kernel(x_ref, o_ref, *, qmax):
    """Single-block path: global abs-max + quantize/dequantize fused."""
    x = x_ref[...].astype(jnp.float32)
    max_val = jnp.max(jnp.abs(x)) + 1e-8           # matches quant_max() epsilon
    w = x * qmax / max_val                          # exact op order of the module
    o_ref[...] = (jnp.round(w) * max_val / qmax).astype(o_ref.dtype)


def _absmax_partial_kernel(x_ref, o_ref):
    """Per-block partial abs-max -> lane-dense (8, 128) slot per block."""
    x = x_ref[...].astype(jnp.float32)
    m = jnp.max(jnp.abs(x), axis=0, keepdims=True)   # (1, 128)
    o_ref[...] = jnp.broadcast_to(m, o_ref.shape)    # (8, 128)


def _quant_apply_kernel(part_ref, x_ref, o_ref, *, qmax):
    """Quantize/dequantize; global max_val reduced in-kernel from partials."""
    max_val = jnp.max(part_ref[...]) + 1e-8
    x = x_ref[...].astype(jnp.float32)
    w = x * qmax / max_val                           # exact op order of the module
    o_ref[...] = (jnp.round(w) * max_val / qmax).astype(o_ref.dtype)


# --------------------------------------------------------------------------
# Wrapper
# --------------------------------------------------------------------------
def _tpu_generation():
    """Best-effort chip-generation detection ('v5' / 'v6' / 'v7' / None)."""
    try:
        kind = jax.devices()[0].device_kind.lower()
    except Exception:  # pragma: no cover - defensive
        return None
    for gen in ("v5", "v6", "v7"):
        if gen in kind:
            return gen
    return None


def quant_act_lin(x, k_bits=8, *, fast_path_max_f32_bytes=None, tile_rows=None):
    """Pallas equivalent of the PyTorch quant_act_lin module's forward pass."""
    qmax = 2.0 ** (k_bits - 1) - 1.0
    orig_shape = x.shape
    orig_dtype = x.dtype
    n = x.size
    if n == 0:
        return x
    itemsize = x.dtype.itemsize

    gen = _tpu_generation()
    if tile_rows is None:
        # 2 MiB f32 tiles on v6e/v7x (amortizes ~0.35us/step overhead at high
        # HBM BW), 1 MiB on v5e / unknown backends.
        tile_rows = 4096 if gen in ("v6", "v7") else 2048
    assert tile_rows % 8 == 0, "tile_rows must be a multiple of 8"
    if fast_path_max_f32_bytes is None:
        # Fused path does 2N HBM traffic vs 3N for two-pass: extend it as far
        # as VMEM comfortably allows.  v5e/v6e: 128 MiB physical VMEM.
        # v7x / unknown: 64 MiB physical, and the two-pass parallel grid can
        # use both TensorCores, so cut over earlier.
        fast_path_max_f32_bytes = (16 << 20) if gen in ("v5", "v6") else (8 << 20)

    flat = x.reshape(-1)                      # original dtype, no astype copy
    if n % _LANES != 0:
        # Unavoidable copy: the lane-dense 2-D reshape needs a multiple of 128.
        padded_n = pl.cdiv(n, _LANES) * _LANES
        flat = jnp.pad(flat, (0, padded_n - n))      # zeros cannot raise |x| max
    else:
        padded_n = n
    rows = padded_n // _LANES
    x2d = flat.reshape(rows, _LANES)

    f32_slab_bytes = rows * _LANES * 4
    use_fast = (f32_slab_bytes <= fast_path_max_f32_bytes) or (rows < tile_rows)

    if use_fast:
        # ---------------- single fused pass (whole slab one block) ----------
        io_bytes = 2 * rows * _LANES * itemsize
        vmem_cap = (56 << 20) if gen == "v7" else (100 << 20)
        vmem_limit = int(min(io_bytes + 2 * f32_slab_bytes + (4 << 20), vmem_cap))
        q2d = pl.pallas_call(
            functools.partial(_fused_quant_kernel, qmax=qmax),
            out_shape=jax.ShapeDtypeStruct((rows, _LANES), orig_dtype),
            grid=(1,),
            in_specs=[pl.BlockSpec((rows, _LANES), lambda i: (0, 0))],
            out_specs=pl.BlockSpec((rows, _LANES), lambda i: (0, 0)),
            compiler_params=pltpu.CompilerParams(
                dimension_semantics=("arbitrary",),
                vmem_limit_bytes=vmem_limit),
            cost_estimate=pl.CostEstimate(
                flops=7 * rows * _LANES, transcendentals=0,
                bytes_accessed=io_bytes),
        )(x2d)
    else:
        # ---------------- two-pass path with large tiles ---------------------
        num_full = rows // tile_rows          # full tiles only -> never OOB
        rows_full = num_full * tile_rows
        grid_apply = pl.cdiv(rows, tile_rows)

        # Pass 1: per-block partial abs-max, fully parallel grid (megacore-
        # friendly on v7x), lane-dense (8, num_full*128) output.
        partials = pl.pallas_call(
            _absmax_partial_kernel,
            out_shape=jax.ShapeDtypeStruct((8, num_full * _LANES), jnp.float32),
            grid=(num_full,),
            in_specs=[pl.BlockSpec((tile_rows, _LANES), lambda i: (i, 0))],
            out_specs=pl.BlockSpec((8, _LANES), lambda i: (0, i)),
            compiler_params=pltpu.CompilerParams(
                dimension_semantics=("parallel",)),
            cost_estimate=pl.CostEstimate(
                flops=2 * rows_full * _LANES, transcendentals=0,
                bytes_accessed=rows_full * _LANES * itemsize
                               + num_full * _LANES * 8 * 4),
        )(x2d)

        # Tail (< one tile) that pass 1 deliberately skipped: tiny wrapper-side
        # reduce (<= one tile of data), folded into the partials.
        if rows_full < rows:
            tail_max = jnp.max(jnp.abs(x2d[rows_full:, :].astype(jnp.float32)))
            partials = jnp.maximum(partials, tail_max)

        # Keep the per-step in-kernel reduce negligible for very large tensors.
        if num_full > _MAX_INKERNEL_PARTIAL_BLOCKS:
            partials = jnp.max(partials.reshape(8, num_full, _LANES), axis=1)
        part_shape = partials.shape

        # Pass 2: elementwise quantize/dequantize.  Partials ride along as a
        # small resident VMEM input; max_val / scaling computed in-kernel, so
        # there is no separate XLA reduction dispatch on the critical path.
        # The last (partial) block's OOB rows produce garbage that Pallas drops
        # on writeback.
        q2d = pl.pallas_call(
            functools.partial(_quant_apply_kernel, qmax=qmax),
            out_shape=jax.ShapeDtypeStruct((rows, _LANES), orig_dtype),
            grid=(grid_apply,),
            in_specs=[
                pl.BlockSpec(part_shape, lambda i: (0, 0)),
                pl.BlockSpec((tile_rows, _LANES), lambda i: (i, 0)),
            ],
            out_specs=pl.BlockSpec((tile_rows, _LANES), lambda i: (i, 0)),
            compiler_params=pltpu.CompilerParams(
                dimension_semantics=("parallel",)),
            cost_estimate=pl.CostEstimate(
                flops=6 * rows * _LANES, transcendentals=0,
                bytes_accessed=2 * rows * _LANES * itemsize),
        )(partials, x2d)

    out = q2d.reshape(-1)
    if padded_n != n:
        out = out[:n]
    return out.reshape(orig_shape)


# --------------------------------------------------------------------------
# Reference + checks
# --------------------------------------------------------------------------
def _reference(x, k_bits=8):
    qmax = 2.0 ** (k_bits - 1) - 1.0
    x32 = x.astype(jnp.float32)
    max_val = jnp.max(jnp.abs(x32)) + 1e-8
    w = x32 * qmax / max_val
    return (jnp.round(w) * max_val / qmax).astype(x.dtype)


def _check(out, x, k_bits, name):
    ref = _reference(x, k_bits)
    qmax = 2.0 ** (k_bits - 1) - 1.0
    step = float((jnp.max(jnp.abs(x.astype(jnp.float32))) + 1e-8) / qmax)
    diff = jnp.abs(out.astype(jnp.float32) - ref.astype(jnp.float32))
    assert out.shape == x.shape and out.dtype == x.dtype, f"{name}: shape/dtype"
    # Exact in practice; allow rare one-quant-step flips from round-half-to-even
    # ties under 1-ulp division differences between backends.
    assert bool(jnp.all(diff <= 1.0001 * step)), f"{name}: error exceeds one step"
    mismatches = int(jnp.sum(diff > 0.5 * step))
    assert mismatches <= max(8, x.size // 100000), f"{name}: too many mismatches"


if __name__ == "__main__":
    k_bits = 8
    key = jax.random.PRNGKey(0)
    k1, k2, k3 = jax.random.split(key, 3)

    # 1) Small activation (fused single-pass path, default tuning).
    x_small = jax.random.normal(k1, (2, 4, 16, 16), dtype=jnp.float32)
    out_small = jax.block_until_ready(quant_act_lin(x_small, k_bits=k_bits))
    _check(out_small, x_small, k_bits, "fast-path")

    # 2) Tiny unaligned size (n % 128 != 0): exercises the lane-pad/slice path.
    x_odd = jax.random.normal(k2, (3, 5, 7), dtype=jnp.float32)
    out_odd = jax.block_until_ready(quant_act_lin(x_odd, k_bits=k_bits))
    _check(out_odd, x_odd, k_bits, "unaligned-fast-path")

    # 3) Larger activation forced onto the two-pass tiled path (12800 rows,
    #    1 MiB tiles -> 6 full blocks + a masked-free tail + a partial pass-2
    #    block), keeping the test small while covering the streaming path.
    x_big = jax.random.normal(k3, (5, 80, 64, 64), dtype=jnp.float32)
    out_big = jax.block_until_ready(
        quant_act_lin(x_big, k_bits=k_bits,
                      fast_path_max_f32_bytes=1 << 20, tile_rows=2048))
    _check(out_big, x_big, k_bits, "two-pass")

    print("KERNEL_OK")
</pallas_src>

<mosaic_0001>
module attributes {stable_mosaic.version = 11 : i64} {
  func.func @_fused_quant_kernel(%arg0: i32, %arg1: memref<16x128xf32, #tpu.memory_space<vmem>>, %arg2: memref<16x128xf32, #tpu.memory_space<vmem>>) attributes {dimension_semantics = [#tpu.dimension_semantics<arbitrary>], iteration_bounds = array<i64: 1>, scalar_prefetch = 0 : i64, scratch_operands = 0 : i64, tpu.core_type = #tpu.core_type<tc>, window_params = [{pipeline_mode = #tpu.pipeline_mode<synchronous>, transform_indices = @transform_0, window_bounds = array<i64: 16, 128>}, {pipeline_mode = #tpu.pipeline_mode<synchronous>, transform_indices = @transform_1, window_bounds = array<i64: 16, 128>}]} {
    %c0 = arith.constant 0 : index
    %c0_0 = arith.constant 0 : index
    %0 = vector.load %arg1[%c0, %c0_0] : memref<16x128xf32, #tpu.memory_space<vmem>>, vector<16x128xf32>
    %1 = math.absf %0 : vector<16x128xf32>
    %2 = vector.shape_cast %1 : vector<16x128xf32> to vector<1x16x128xf32>
    %cst = arith.constant dense<0xFF800000> : vector<1xf32>
    %3 = vector.multi_reduction <maximumf>, %2, %cst [1, 2] : vector<1x16x128xf32> to vector<1xf32>
    %4 = vector.shape_cast %3 : vector<1xf32> to vector<1x1x1xf32>
    %5 = vector.extract %4[0, 0, 0] : f32 from vector<1x1x1xf32>
    %cst_1 = arith.constant 9.99999993E-9 : f32
    %6 = arith.addf %5, %cst_1 : f32
    %cst_2 = arith.constant 1.270000e+02 : f32
    %7 = vector.broadcast %cst_2 : f32 to vector<16x128xf32>
    %8 = arith.mulf %0, %7 : vector<16x128xf32>
    %9 = vector.broadcast %6 : f32 to vector<16x128xf32>
    %10 = arith.divf %8, %9 : vector<16x128xf32>
    %11 = math.roundeven %10 : vector<16x128xf32>
    %12 = vector.broadcast %6 : f32 to vector<16x128xf32>
    %13 = arith.mulf %11, %12 : vector<16x128xf32>
    %cst_3 = arith.constant 1.270000e+02 : f32
    %14 = vector.broadcast %cst_3 : f32 to vector<16x128xf32>
    %15 = arith.divf %13, %14 : vector<16x128xf32>
    %c0_4 = arith.constant 0 : index
    %c0_5 = arith.constant 0 : index
    %16 = vector.load %arg2[%c0_4, %c0_5] : memref<16x128xf32, #tpu.memory_space<vmem>>, vector<16x128xf32>
    tpu.vector_store %arg2[%c0_4, %c0_5], %15 {strides = array<i32>} : memref<16x128xf32, #tpu.memory_space<vmem>>, vector<16x128xf32>,
    return
  }
  func.func @transform_0(%arg0: i32) -> (i32, i32) {
    %c0_i32 = arith.constant 0 : i32
    %c0_i32_0 = arith.constant 0 : i32
    %c0_i32_1 = arith.constant 0 : i32
    return %c0_i32, %c0_i32_0 : i32, i32
  }
  func.func @transform_1(%arg0: i32) -> (i32, i32) {
    %c0_i32 = arith.constant 0 : i32
    %c0_i32_0 = arith.constant 0 : i32
    %c0_i32_1 = arith.constant 0 : i32
    return %c0_i32, %c0_i32_0 : i32, i32
  }
}

</mosaic_0001>

<bundles_post_ra>
// kernel: tpu_custom_call.1
= control target key start
LH: loop header
LB: loop body
LE: loop exit
PB: predicated region body
PF: predicated region fallthrough
CT: control target
= control target key end

     0   :  { %6 = vsyncpa [#allocation3], 0  ;;  %s199_s0 = inlined_call_operand.hbm [shape: f32[16,128], index: 0, kind: input, shape index: {}]   ;;  %s200_s1 = inlined_call_operand.hbm [shape: f32[16,128], index: 1, kind: output, shape index: {}]  }
   0x1   :  { %7 = vsyncpa [#allocation4], 0  ;;  %s12_s8 = sshll.u32 %s199_s0, 4  ;;  %s172_s9 = smov [#allocation2]   ;;  %s13_s8 = int_to_ptr.hbm [resolvable:$true] %s12_s8 }
   0x2   :  { %s14_s10 = sshll.u32 %s172_s9, 4  ;;  %s173_s11 = smov 128   ;;  %s15_s10 = int_to_ptr.vmem [resolvable:$true] %s14_s10 }
   0x3   :  { %s174_s12 = smov 8  }
   0x4   :  { %20 = dma.hbm_to_vmem [thread:$0]  %s13_s8, 256, %s15_s10, [#allocation3], %s173_s11, %s173_s11, %s174_s12  }
   0x5   :  { %168 = dma.done.wait [#allocation3], 256  }
   0x6   :  { %169 = vsyncadd [#allocation3], 4294967040  ;;  %v25_v0 = vld [vmem:[#allocation2] sm:$0xff]  ;;  %v26_v1 = vld [vmem:[#allocation2 + $0x8] sm:$0xff]  ;;  %v175_v13 = vmov 127.0   ;;  %s176_s14 = smov [#allocation5]  }
   0x7   :  { %v27_v2 = vand.u32 2147483647, %v25_v0  ;;  %v28_v3 = vand.u32 2147483647, %v26_v1  ;;  %v40_v22 = vmul.f32 127.0, %v25_v0  ;;  %v41_v23 = vmul.f32 127.0, %v26_v1 }
   0x8   :  { %s78_s15 = sshll.u32 %s176_s14, 4  ;;  %s80_s18 = sshll.u32 %s200_s1, 4  ;;  %s79_s15 = int_to_ptr.vmem [resolvable:$true] %s78_s15  ;;  %s81_s18 = int_to_ptr.hbm [resolvable:$true] %s80_s18 }
   0x9   :  { %v29_v4 = vmax.f32 %v27_v2, %v28_v3 }
   0xb   :  { %30 = vmax.xlane.f32.xlu0 %v29_v4 }
  0x7e   :  { %v31_v5 = vpop.xlane.xlu0 %30 }
  0x7f   :  { %v32_v6 = vrot.slane %v31_v5, 4 }
  0x81   :  { %v33_v7 = vmax.f32 %v31_v5, %v32_v6 }
  0x83   :  { %v34_v8 = vrot.slane %v33_v7, 2 }
  0x85   :  { %v35_v9 = vmax.f32 %v33_v7, %v34_v8 }
  0x87   :  { %v36_v10 = vrot.slane %v35_v9, 1 }
  0x89   :  { %v37_v11 = vmax.f32 %v35_v9, %v36_v10 }
  0x8b   :  { %93 = vpush %v37_v11 }
  0xbc   :  { %s94_s0 = spop %93 }
  0xbd   :  { %s39_s13 = sadd.f32 1e-08, %s94_s0 }
  0xbf   :  { %v42_v12 = vstv %s39_s13 }
  0xc0   :  { %116 = vrcp.f32 %v42_v12  ;;  %v54_v18 = vand.u32 2147483648, %v42_v12  ;;  %v52_v20 = vand.u32 2147483647, %v42_v12  ;;  %vm48_vm1 = vweird.f32 %v42_v12 }
  0xc1   :  { %118 = vrcp.f32 %v175_v13 }
  0xc2   :  { %v55_v25 = vor.u32 1.1754944e-38, %v54_v18  ;;  %vm53_vm3 = vcmp.eq.f32.partialorder %v52_v20, 8.507059e+37 }
  0xc6   :  { %v117_v14 = vpop.eup %116 }
  0xc7   :  { %v44_v15 = vmul.f32 %v117_v14, %v42_v12  ;;  %v119_v16 = vpop.eup %118  ;;  %vm49_vm0 = vweird.f32 %v117_v14 }
  0xc8   :  { %v64_v21 = vmul.f32 127.0, %v119_v16  ;;  %vm50_vm2 = vmor %vm48_vm1, %vm49_vm0  ;;  %vm68_vm4 = vweird.f32 %v119_v16 }
  0xc9   :  { %v45_v17 = vsub.f32 1.0, %v44_v15 }
  0xca   :  { %v65_v27 = vsub.f32 1.0, %v64_v21 }
  0xcb   :  { %v46_v19 = vmul.f32 %v117_v14, %v45_v17 }
  0xcc   :  { %v66_v32 = vmul.f32 %v119_v16, %v65_v27 }
  0xcd   :  { %v47_v24 = vadd.f32 %v117_v14, %v46_v19 }
  0xce   :  { %v67_v40 = vadd.f32 %v119_v16, %v66_v32 }
  0xcf   :  { %v51_v26 = vsel %vm50_vm2, %v117_v14, %v47_v24 }
  0xd0   :  { %v56_v28 = vsel %vm53_vm3, %v55_v25, %v51_v26  ;;  %v69_v46 = vsel %vm68_vm4, %v119_v16, %v67_v40 }
  0xd1   :  { %v57_v29 = vmul.f32 %v56_v28, %v40_v22  ;;  %v58_v30 = vmul.f32 %v56_v28, %v41_v23 }
  0xd3   :  { %v97_v31 = vcvt.f32.s32 %v57_v29  ;;  %v105_v33 = vcvt.f32.s32 %v58_v30  ;;  %v95_v35 = vand.u32 2147483647, %v57_v29  ;;  %v100_v38 = vand.u32 2147483648, %v57_v29 }
  0xd4   :  { %v103_v39 = vand.u32 2147483647, %v58_v30  ;;  %v108_v42 = vand.u32 2147483648, %v58_v30 }
  0xd5   :  { %v98_v34 = vcvt.s32.f32 %v97_v31  ;;  %v106_v36 = vcvt.s32.f32 %v105_v33  ;;  %vm96_vm5 = vcmp.lt.f32.partialorder %v95_v35, 8388608.0 }
  0xd6   :  { %vm104_vm6 = vcmp.lt.f32.partialorder %v103_v39, 8388608.0 }
  0xd7   :  { %v99_v37 = vand.u32 2147483647, %v98_v34  ;;  %v107_v41 = vand.u32 2147483647, %v106_v36 }
  0xd9   :  { %v101_v43 = vor.u32 %v100_v38, %v99_v37  ;;  %v109_v44 = vor.u32 %v108_v42, %v107_v41 }
  0xdb   :  { %v102_v45 = vsel %vm96_vm5, %v101_v43, %v57_v29  ;;  %v110_v47 = vsel %vm104_vm6, %v109_v44, %v58_v30 }
  0xdc   :  { %v61_v48 = vmul.f32 %v102_v45, %v42_v12  ;;  %v62_v49 = vmul.f32 %v110_v47, %v42_v12 }
  0xde   :  { %v70_v50 = vmul.f32 %v69_v46, %v61_v48  ;;  %v71_v51 = vmul.f32 %v69_v46, %v62_v49 }
  0xe0   :  { %72 = vst [vmem:[#allocation5] sm:$0xff] %v70_v50 }
  0xe1   :  { %73 = vst [vmem:[#allocation5 + $0x8] sm:$0xff] %v71_v51 }
  0xe2   :  { %86 = dma.vmem_to_hbm [thread:$0]  %s79_s15, 256, %s81_s18, [#allocation4], %s173_s11, %s173_s11, %s174_s12  }
  0xe3   :  { %170 = dma.done.wait [#allocation4], 256  }
  0xe4   :  { %171 = vsyncadd [#allocation4], 4294967040 }
  0xe5   :  { %91 = vsyncpa [#allocation3], 1 }
  0xe6   :  { %92 = vsyncpa [#allocation4], 1 }

</bundles_post_ra>
